<compile_context>
chip_gen: v7x
topology: tpu7x:2x2x1
jax: 0.10.0
libtpu: 0.0.40
codegen_flags: <defaults>
</compile_context>

<pallas_src>
import functools

import jax
import jax.numpy as jnp
from jax.experimental import pallas as pl
from jax.experimental.pallas import tpu as pltpu


def _round_up(x, m):
    return (x + m - 1) // m * m


# --------------------------------------------------------------------------
# Parallel matmul + bias kernel (used for x @ W_ih + b and h @ W_fc + b_fc).
# --------------------------------------------------------------------------
def _matmul_bias_kernel(x_ref, w_ref, b_ref, o_ref):
    o_ref[...] = (jnp.dot(x_ref[...], w_ref[...],
                          preferred_element_type=jnp.float32)
                  + b_ref[...]).astype(o_ref.dtype)


def matmul_bias_pallas(x, w, b, *, tm=128):
    """(M, K) @ (K, N) + (1, N) -> (M, N). Tiled over M; K and N full blocks."""
    M, K = x.shape
    N = w.shape[1]
    tm = min(tm, _round_up(M, 8))          # sublane-aligned M tile
    M_pad = _round_up(M, tm)
    if M_pad != M:
        x = jnp.pad(x, ((0, M_pad - M), (0, 0)))

    out = pl.pallas_call(
        _matmul_bias_kernel,
        out_shape=jax.ShapeDtypeStruct((M_pad, N), jnp.float32),
        grid_spec=pltpu.PrefetchScalarGridSpec(
            num_scalar_prefetch=0,
            grid=(M_pad // tm,),
            in_specs=[
                pl.BlockSpec((tm, K), lambda i: (i, 0)),   # activations
                pl.BlockSpec((K, N), lambda i: (0, 0)),    # constant weight
                pl.BlockSpec((1, N), lambda i: (0, 0)),    # constant bias
            ],
            out_specs=pl.BlockSpec((tm, N), lambda i: (i, 0)),
        ),
        compiler_params=pltpu.CompilerParams(
            dimension_semantics=("parallel",)),
    )(x, w, b)
    return out[:M] if M_pad != M else out


# --------------------------------------------------------------------------
# Recurrent LSTM kernel: one grid step per batch tile, fori_loop over time,
# h/c carried in registers. Input is the precomputed x @ W_ih + b.
# --------------------------------------------------------------------------
def _lstm_recurrent_kernel(gx_ref, whh_ref, h_ref, *,
                           hidden_size, seq_len, unroll):
    H = hidden_size
    B = gx_ref.shape[1]

    def step(t, carry):
        h_prev, c_prev = carry
        # Only the recurrent matmul is on the serial critical path.
        gates = gx_ref[t] + jnp.dot(h_prev, whh_ref[...],
                                    preferred_element_type=jnp.float32)
        # PyTorch gate order (i, f, g, o). At production H (multiple of 128)
        # these slices are lane-aligned; reshape-free.
        i_g = jax.nn.sigmoid(gates[:, 0 * H:1 * H])
        f_g = jax.nn.sigmoid(gates[:, 1 * H:2 * H])
        g_g = jnp.tanh(gates[:, 2 * H:3 * H])
        o_g = jax.nn.sigmoid(gates[:, 3 * H:4 * H])
        c_new = f_g * c_prev + i_g * g_g
        h_new = o_g * jnp.tanh(c_new)
        h_ref[t] = h_new.astype(h_ref.dtype)
        return (h_new, c_new)

    zeros = jnp.zeros((B, H), jnp.float32)
    jax.lax.fori_loop(0, seq_len, step, (zeros, zeros), unroll=unroll)


def lstm_recurrent_pallas(gates_x, w_hh):
    """gates_x: (T, B, 4H) = x @ W_ih + b_ih + b_hh; w_hh: (H, 4H) -> h (T, B, H)."""
    T, B, H4 = gates_x.shape
    H = w_hh.shape[0]

    bt = min(_round_up(B, 8), 256)         # sublane-aligned batch tile
    B_pad = _round_up(B, bt)
    if B_pad != B:
        gates_x = jnp.pad(gates_x, ((0, 0), (0, B_pad - B), (0, 0)))

    kernel = functools.partial(_lstm_recurrent_kernel,
                               hidden_size=H, seq_len=T, unroll=T <= 32)

    h = pl.pallas_call(
        kernel,
        out_shape=jax.ShapeDtypeStruct((T, B_pad, H), jnp.float32),
        grid_spec=pltpu.PrefetchScalarGridSpec(
            num_scalar_prefetch=0,
            grid=(B_pad // bt,),           # batch tiles are independent
            in_specs=[
                pl.BlockSpec((T, bt, H4), lambda b: (0, b, 0)),  # gate inputs
                pl.BlockSpec((H, H4), lambda b: (0, 0)),         # W_hh^T
            ],
            out_specs=pl.BlockSpec((T, bt, H), lambda b: (0, b, 0)),
        ),
        compiler_params=pltpu.CompilerParams(
            dimension_semantics=("parallel",)),   # megacore over batch tiles
    )(gates_x, w_hh)
    return h[:, :B, :] if B_pad != B else h


# --------------------------------------------------------------------------
# Parameters and forward pass.
# --------------------------------------------------------------------------
class DecoderRNNParams:
    """Deterministic synthetic parameters (shapes match the torch module)."""

    def __init__(self, embed_size, hidden_size, vocab_size, key):
        ks = jax.random.split(key, 7)
        E, H, V = embed_size, hidden_size, vocab_size

        def xavier(k, shape):
            fan_in, fan_out = shape[1], shape[0]
            bound = (6.0 / (fan_in + fan_out)) ** 0.5
            return jax.random.uniform(k, shape, jnp.float32, -bound, bound)

        u = 1.0 / (H ** 0.5)
        # nn.Embedding(vocab, embed), xavier init
        self.embed = xavier(ks[0], (V, E))
        # nn.LSTM weights, stored transposed for x @ W
        self.w_ih = jax.random.uniform(ks[1], (E, 4 * H), jnp.float32, -u, u)
        self.w_hh = jax.random.uniform(ks[2], (H, 4 * H), jnp.float32, -u, u)
        b_ih = jax.random.uniform(ks[3], (4 * H,), jnp.float32, -u, u)
        b_hh = jax.random.uniform(ks[4], (4 * H,), jnp.float32, -u, u)
        self.b = (b_ih + b_hh).reshape(1, 4 * H)
        # nn.Linear(hidden, vocab), xavier weight, default-uniform bias
        self.w_fc = xavier(ks[5], (V, H)).T            # stored (H, V)
        self.b_fc = jax.random.uniform(ks[6], (1, V), jnp.float32, -u, u)


def decoder_rnn_forward(params, features, captions):
    """features: (B, E) f32, captions: (B, L) int32 -> logits (B, L, V) f32."""
    # TODO(synk): embedding gather / concat / transposes are plain-JAX glue.
    cap = captions[:, :-1]                                   # (B, L-1)
    cap_emb = jnp.take(params.embed, cap, axis=0)            # (B, L-1, E)
    inputs = jnp.concatenate([features[:, None, :], cap_emb], axis=1)  # (B,T,E)
    x_tbe = jnp.transpose(inputs, (1, 0, 2))                 # (T, B, E)
    T, B, E = x_tbe.shape
    H = params.w_hh.shape[0]
    V = params.w_fc.shape[1]

    # 1) Input projection for ALL timesteps at once (fully parallel).
    gx = matmul_bias_pallas(x_tbe.reshape(T * B, E), params.w_ih, params.b)
    gx = gx.reshape(T, B, 4 * H)                             # (T, B, 4H)

    # 2) Serial recurrence: only h @ W_hh per step, h/c in registers.
    h_tbh = lstm_recurrent_pallas(gx, params.w_hh)           # (T, B, H)

    # 3) FC over ALL timesteps at once (fully parallel, lane-dense V output).
    h_bth = jnp.transpose(h_tbh, (1, 0, 2)).reshape(B * T, H)
    logits = matmul_bias_pallas(h_bth, params.w_fc, params.b_fc)
    return logits.reshape(B, T, V)                           # (B, T, V)


def _reference_forward(params, features, captions):
    """Pure-JAX reference (lax.scan LSTM) for a correctness sanity check."""
    cap = captions[:, :-1]
    cap_emb = jnp.take(params.embed, cap, axis=0)
    inputs = jnp.concatenate([features[:, None, :], cap_emb], axis=1)
    x_tbe = jnp.transpose(inputs, (1, 0, 2))
    B = features.shape[0]
    H = params.w_hh.shape[0]

    def step(carry, x_t):
        h, c = carry
        g = x_t @ params.w_ih + h @ params.w_hh + params.b
        i = jax.nn.sigmoid(g[:, 0 * H:1 * H])
        f = jax.nn.sigmoid(g[:, 1 * H:2 * H])
        gg = jnp.tanh(g[:, 2 * H:3 * H])
        o = jax.nn.sigmoid(g[:, 3 * H:4 * H])
        c = f * c + i * gg
        h = o * jnp.tanh(c)
        return (h, c), h @ params.w_fc + params.b_fc

    init = (jnp.zeros((B, H), jnp.float32), jnp.zeros((B, H), jnp.float32))
    _, ys = jax.lax.scan(step, init, x_tbe)
    return jnp.transpose(ys, (1, 0, 2))


if __name__ == "__main__":
    B = 2          # batch
    E = 32         # embed_size
    H = 32         # hidden_size
    V = 128        # vocab_size
    L = 8          # caption length (=> T = 8 timesteps after [:, :-1] + feature)

    key = jax.random.PRNGKey(0)
    k_p, k_f, k_c = jax.random.split(key, 3)

    params = DecoderRNNParams(E, H, V, k_p)
    features = jax.random.normal(k_f, (B, E), jnp.float32)
    captions = jax.random.randint(k_c, (B, L), 0, V, jnp.int32)

    out = decoder_rnn_forward(params, features, captions)
    out = jax.block_until_ready(out)

    ref = _reference_forward(params, features, captions)
    assert out.shape == (B, L, V)
    assert jnp.allclose(out, ref, atol=1e-4, rtol=1e-4), "mismatch vs reference"

    print("KERNEL_OK")
</pallas_src>

<mosaic_0001>
module attributes {stable_mosaic.version = 11 : i64} {
  func.func @_matmul_bias_kernel(%arg0: i32, %arg1: memref<16x32xf32, #tpu.memory_space<vmem>>, %arg2: memref<32x128xf32, #tpu.memory_space<vmem>>, %arg3: memref<1x128xf32, #tpu.memory_space<vmem>>, %arg4: memref<16x128xf32, #tpu.memory_space<vmem>>) attributes {dimension_semantics = [#tpu.dimension_semantics<parallel>], iteration_bounds = array<i64: 1>, scalar_prefetch = 0 : i64, scratch_operands = 0 : i64, tpu.core_type = #tpu.core_type<tc>, window_params = [{transform_indices = @transform_0, window_bounds = array<i64: 16, 32>}, {pipeline_mode = #tpu.pipeline_mode<synchronous>, transform_indices = @transform_1, window_bounds = array<i64: 32, 128>}, {pipeline_mode = #tpu.pipeline_mode<synchronous>, transform_indices = @transform_2, window_bounds = array<i64: 1, 128>}, {transform_indices = @transform_3, window_bounds = array<i64: 16, 128>}]} {
    %c0 = arith.constant 0 : index
    %c0_0 = arith.constant 0 : index
    %0 = vector.load %arg1[%c0, %c0_0] : memref<16x32xf32, #tpu.memory_space<vmem>>, vector<16x32xf32>
    %c0_1 = arith.constant 0 : index
    %c0_2 = arith.constant 0 : index
    %1 = vector.load %arg2[%c0_1, %c0_2] : memref<32x128xf32, #tpu.memory_space<vmem>>, vector<32x128xf32>
    %cst = arith.constant dense<0.000000e+00> : vector<16x128xf32>
    %2 = tpu.matmul %0, %1, %cst {dimension_numbers = #tpu.dot_dimension_numbers<[1], [0], [0], [1], [0, 0, 1, 1], [], []>} : vector<16x32xf32>, vector<32x128xf32>, vector<16x128xf32> -> vector<16x128xf32>
    %c0_3 = arith.constant 0 : index
    %c0_4 = arith.constant 0 : index
    %3 = vector.load %arg3[%c0_3, %c0_4] : memref<1x128xf32, #tpu.memory_space<vmem>>, vector<1x128xf32>
    %4 = vector.broadcast %3 : vector<1x128xf32> to vector<16x128xf32>
    %5 = arith.addf %2, %4 : vector<16x128xf32>
    %c0_5 = arith.constant 0 : index
    %c0_6 = arith.constant 0 : index
    %6 = vector.load %arg4[%c0_5, %c0_6] : memref<16x128xf32, #tpu.memory_space<vmem>>, vector<16x128xf32>
    tpu.vector_store %arg4[%c0_5, %c0_6], %5 {strides = array<i32>} : memref<16x128xf32, #tpu.memory_space<vmem>>, vector<16x128xf32>,
    return
  }
  func.func @transform_0(%arg0: i32) -> (i32, i32) {
    %c0_i32 = arith.constant 0 : i32
    %c0_i32_0 = arith.constant 0 : i32
    return %arg0, %c0_i32 : i32, i32
  }
  func.func @transform_1(%arg0: i32) -> (i32, i32) {
    %c0_i32 = arith.constant 0 : i32
    %c0_i32_0 = arith.constant 0 : i32
    %c0_i32_1 = arith.constant 0 : i32
    return %c0_i32, %c0_i32_0 : i32, i32
  }
  func.func @transform_2(%arg0: i32) -> (i32, i32) {
    %c0_i32 = arith.constant 0 : i32
    %c0_i32_0 = arith.constant 0 : i32
    %c0_i32_1 = arith.constant 0 : i32
    return %c0_i32, %c0_i32_0 : i32, i32
  }
  func.func @transform_3(%arg0: i32) -> (i32, i32) {
    %c0_i32 = arith.constant 0 : i32
    %c0_i32_0 = arith.constant 0 : i32
    return %arg0, %c0_i32 : i32, i32
  }
}

</mosaic_0001>

<bundles_post_ra>
// kernel: tpu_custom_call.1
= control target key start
LH: loop header
LB: loop body
LE: loop exit
PB: predicated region body
PF: predicated region fallthrough
CT: control target
= control target key end

     0   :  { %8 = vsyncpa [#allocation3], 0  ;;  %s336_s0 = inlined_call_operand.hbm [shape: f32[16,32], index: 0, kind: input, shape index: {}]   ;;  %s337_s1 = inlined_call_operand.hbm [shape: f32[32,128], index: 1, kind: input, shape index: {}]   ;;  %s338_s2 = inlined_call_operand.vmem [shape: f32[1,128], index: 2, kind: input, shape index: {}]   ;;  %s339_s3 = inlined_call_operand.hbm [shape: f32[16,128], index: 3, kind: output, shape index: {}]  }
   0x1   :  { %9 = vsyncpa [#allocation6], 0 }
   0x2   :  { %10 = vsyncpa [#allocation4], 0  ;;  %s263_s12 = smov [#allocation2]   ;;  %s191_s16 = scalar_lea.hbm %s336_s0, 256 }
   0x3   :  { %s16_s13 = sshll.u32 %s263_s12, 4  ;;  %p192_p0 = scmp.ne.s32.totalorder %s336_s0, %s191_s16  ;;  %s17_s13 = int_to_ptr.vmem [resolvable:$true] %s16_s13 }
   0x4   :  { %p195_p1 = scmp.lt.u32.totalorder %s191_s16, %s336_s0 }
   0x6   :  { %p197_p2 = pnand %p195_p1, %p192_p0 }
   0x8   :  { %200 = shalt.err (!%p197_p2)
}
   0x9   :  { %s201_s21 = scalar_lea.vmem %s17_s13, 256  ;;  %p206_p4 = scmp.lt.s32.totalorder %s17_s13, %s17_s13 }
   0xa   :  { %p202_p3 = scmp.ne.s32.totalorder %s17_s13, %s201_s21  ;;  %p207_p5 = scmp.lt.s32.totalorder %s201_s21, %s201_s21 }
   0xc   :  { %p208_p6 = por %p207_p5, %p206_p4 }
   0xe   :  { %p209_p7 = pnand %p208_p6, %p202_p3 }
  0x10   :  { %212 = shalt.err (!%p209_p7)
}
  0x11   :  { %s264_s22 = smov 128   ;;  %s265_s23 = smov 8  }
  0x12   :  { %22 = dma.hbm_to_vmem [thread:$0]  %s336_s0, 256, %s17_s13, [#allocation3], %s264_s22, %s264_s22, %s265_s23  }
  0x13   :  { %s266_s26 = smov [#allocation5]   ;;  %s213_s30 = scalar_lea.hbm %s337_s1, 512 }
  0x14   :  { %s28_s27 = sshll.u32 %s266_s26, 4  ;;  %p214_p8 = scmp.ne.s32.totalorder %s337_s1, %s213_s30  ;;  %s29_s27 = int_to_ptr.vmem [resolvable:$true] %s28_s27 }
  0x15   :  { %p217_p9 = scmp.lt.u32.totalorder %s213_s30, %s337_s1 }
  0x17   :  { %p219_p10 = pnand %p217_p9, %p214_p8 }
  0x19   :  { %222 = shalt.err (!%p219_p10)
}
  0x1a   :  { %s223_s8 = scalar_lea.vmem %s29_s27, 512  ;;  %p228_p12 = scmp.lt.s32.totalorder %s29_s27, %s29_s27 }
  0x1b   :  { %p224_p11 = scmp.ne.s32.totalorder %s29_s27, %s223_s8  ;;  %p229_p13 = scmp.lt.s32.totalorder %s223_s8, %s223_s8 }
  0x1d   :  { %p230_p0 = por %p229_p13, %p228_p12 }
  0x1f   :  { %p231_p1 = pnand %p230_p0, %p224_p11 }
  0x21   :  { %234 = shalt.err (!%p231_p1)
}
  0x22   :  { %34 = dma.hbm_to_vmem [thread:$0]  %s337_s1, 512, %s29_s27, [#allocation6], %s264_s22, %s264_s22, %s265_s23  }
  0x23   :  { %257 = dma.done.wait [#allocation3], 256  }
  0x24   :  { %258 = vsyncadd [#allocation3], 4294967040 }
  0x25   :  { %259 = dma.done.wait [#allocation6], 512  }
  0x26   :  { %260 = vsyncadd [#allocation6], 4294966784  ;;  %vm56_vm0 = vcmask 261120   ;;  %v45_v0 = vld [vmem:[#allocation5] sm:$0xff]  ;;  %v46_v1 = vld [vmem:[#allocation5 + $0x8] sm:$0xff]  ;;  %s267_s11 = smov [#allocation7]  }
  0x27   :  { %v47_v2 = vld [vmem:[#allocation5 + $0x10] sm:$0xff]  ;;  %v178_v3 = vpack.c.bf16 %v46_v1, %v45_v0  ;;  %v48_v4 = vld [vmem:[#allocation5 + $0x18] sm:$0xff]  ;;  %s145_s12 = sshll.u32 %s267_s11, 4  ;;  %s146_s12 = int_to_ptr.vmem [resolvable:$true] %s145_s12 }
  0x28   :  { %v43_v5 = vld [vmem:[#allocation2] sm:$0xff]  ;;  %v182_v6 = vpack.c.bf16 %v48_v4, %v47_v2  ;;  %v44_v7 = vld [vmem:[#allocation2 + $0x8] sm:$0xff]  ;;  %s235_s13 = scalar_lea.vmem %s146_s12, 256  ;;  %p240_p3 = scmp.lt.s32.totalorder %s146_s12, %s146_s12 }
  0x29   :  { %175 = vmatprep.mubr.msk.f32.mxu0 %vm56_vm0, %v43_v5  ;;  %179 = vmatprep.subr.bf16.mxu0 %v178_v3  ;;  %v158_v8 = vld [vmem:[%s338_s2] ss:$0 sm:$0xff]  ;;  %p236_p2 = scmp.ne.s32.totalorder %s146_s12, %s235_s13  ;;  %p241_p4 = scmp.lt.s32.totalorder %s235_s13, %s235_s13 }
  0x2a   :  { %181 = vmatpush3.bf16.msra.mxu0 %v178_v3 }
  0x2b   :  { %183 = vmatprep.subr.bf16.mxu0 %v182_v6  ;;  %p242_p5 = por %p241_p4, %p240_p3 }
  0x2d   :  { %p243_p6 = pnand %p242_p5, %p236_p2 }
  0x2e   :  { %185 = vmatpush3.bf16.msra.mxu0 %v182_v6 }
  0x31   :  { %176 = vmatmul.mubr.msk.f32.vlgmr.msra.gmra.mrb[0].mxu0 %vm56_vm0, %v44_v7 }
 0x104   :  { %v177_v9 = vpop.f32.mrb[0].mxu0 }
 0x105   :  { %v135_v10 = vadd.f32 %v177_v9, %v158_v8  ;;  %v129_v11 = vpop.f32.mrb[1].mxu0 }
 0x106   :  { %v130_v12 = vadd.f32 %v158_v8, %v129_v11 }
 0x107   :  { %139 = vst [vmem:[#allocation7 + $0x8] sm:$0xff] %v135_v10 }
 0x108   :  { %138 = vst [vmem:[#allocation7] sm:$0xff] %v130_v12 }
 0x109   :  { %246 = shalt.err (!%p243_p6)
}
 0x10a   :  { %s247_s2 = scalar_lea.hbm %s339_s3, 256 }
 0x10b   :  { %p248_p7 = scmp.ne.s32.totalorder %s339_s3, %s247_s2  ;;  %p251_p8 = scmp.lt.u32.totalorder %s247_s2, %s339_s3 }
 0x10d   :  { %p253_p9 = pnand %p251_p8, %p248_p7 }
 0x10f   :  { %256 = shalt.err (!%p253_p9)
}
 0x110   :  { %151 = dma.vmem_to_hbm [thread:$0]  %s146_s12, 256, %s339_s3, [#allocation4], %s264_s22, %s264_s22, %s265_s23  }
 0x111   :  { %261 = dma.done.wait [#allocation4], 256  }
 0x112   :  { %262 = vsyncadd [#allocation4], 4294967040 }
 0x113   :  { %155 = vsyncpa [#allocation3], 1 }
 0x114   :  { %156 = vsyncpa [#allocation6], 1 }
 0x115   :  { %157 = vsyncpa [#allocation4], 1 }

</bundles_post_ra>
